<compile_context>
chip_gen: v7x
topology: tpu7x:2x2x1
jax: 0.10.0
libtpu: 0.0.40
codegen_flags: <defaults>
</compile_context>

<pallas_src>
import functools

import jax
import jax.numpy as jnp
from jax.experimental import pallas as pl
from jax.experimental.pallas import tpu as pltpu


# ----------------------------------------------------------------------------
# helpers
# ----------------------------------------------------------------------------
def _round_up(x, m):
    return ((x + m - 1) // m) * m


def _pad_rows(x, mult):
    """Zero-pad the leading (row) dim up to a multiple of `mult`."""
    M = x.shape[0]
    Mp = _round_up(M, mult)
    if Mp != M:
        x = jnp.pad(x, ((0, Mp - M), (0, 0)))
    return x


def _pad_cols(x, mult=128):
    """Zero-pad the last dim up to a multiple of `mult` (lane-dense stores)."""
    Nc = x.shape[-1]
    Np = _round_up(Nc, mult)
    if Np != Nc:
        pad = [(0, 0)] * (x.ndim - 1) + [(0, Np - Nc)]
        x = jnp.pad(x, pad)
    return x


# ----------------------------------------------------------------------------
# Pallas kernels
# ----------------------------------------------------------------------------
def _matmul_bias_kernel(x_ref, w_ref, b_ref, o_ref, *, relu):
    """(TM, K)bf16 @ (K, N)bf16 + bias(f32)  [+ ReLU]  -> (TM, N)f32.

    Used for the backbone 3x3 convs (fused 9-tap im2col => one wide-K matmul).
    """
    acc = jnp.dot(x_ref[...], w_ref[...], preferred_element_type=jnp.float32)
    acc = acc + b_ref[...]
    if relu:
        acc = jnp.maximum(acc, 0.0)
    o_ref[...] = acc


def _mlp2_kernel(x_ref, w1_ref, b1_ref, w2_ref, b2_ref, o_ref):
    """Fused two-layer head: relu(x @ w1 + b1) @ w2 + b2.

    The hidden activation stays in VMEM/vregs (no HBM roundtrip, no extra
    kernel launch).  Used for:
      * RPN: 3x3 conv (+ReLU) -> concatenated 1x1 cls/box heads
      * ROI box head: fc1 (+ReLU) -> concatenated cls_score/bbox_pred
    """
    h = jnp.dot(x_ref[...], w1_ref[...], preferred_element_type=jnp.float32)
    h = jnp.maximum(h + b1_ref[...], 0.0)
    o = jnp.dot(h.astype(w2_ref.dtype), w2_ref[...],
                preferred_element_type=jnp.float32)
    o_ref[...] = o + b2_ref[...]


# ----------------------------------------------------------------------------
# Pallas wrappers
# ----------------------------------------------------------------------------
def matmul_bias(x, w, b, relu=False, tm=256):
    """x: (M, K), w: (K, N), b: (N,) -> (M, N) f32.  bf16 MXU path, M-tiled grid."""
    M, K = x.shape
    N = w.shape[1]
    tm_eff = min(tm, _round_up(M, 8))
    xp = _pad_rows(x, tm_eff).astype(jnp.bfloat16)
    Mp = xp.shape[0]

    out = pl.pallas_call(
        functools.partial(_matmul_bias_kernel, relu=relu),
        out_shape=jax.ShapeDtypeStruct((Mp, N), jnp.float32),
        grid=(Mp // tm_eff,),
        in_specs=[
            pl.BlockSpec((tm_eff, K), lambda i: (i, 0)),
            pl.BlockSpec((K, N), lambda i: (0, 0)),      # weights stay resident
            pl.BlockSpec((1, N), lambda i: (0, 0)),
        ],
        out_specs=pl.BlockSpec((tm_eff, N), lambda i: (i, 0)),
        compiler_params=pltpu.CompilerParams(dimension_semantics=("parallel",)),
    )(xp, w.astype(jnp.bfloat16), b.reshape(1, N).astype(jnp.float32))
    return out[:M]


def mlp2(x, w1, b1, w2, b2, tm=128):
    """Fused relu(x @ w1 + b1) @ w2 + b2 in a single Pallas kernel.

    The second-layer output columns are zero-padded to a multiple of 128 so the
    store is lane-dense (unmasked vst); padding is sliced off on the JAX side.
    """
    M, K = x.shape
    H = w1.shape[1]
    N = w2.shape[1]
    w2p = _pad_cols(w2)
    b2p = _pad_cols(b2.reshape(1, N))
    Np = w2p.shape[1]

    tm_eff = min(tm, _round_up(M, 8))
    xp = _pad_rows(x, tm_eff).astype(jnp.bfloat16)
    Mp = xp.shape[0]

    out = pl.pallas_call(
        _mlp2_kernel,
        out_shape=jax.ShapeDtypeStruct((Mp, Np), jnp.float32),
        grid=(Mp // tm_eff,),
        in_specs=[
            pl.BlockSpec((tm_eff, K), lambda i: (i, 0)),
            pl.BlockSpec((K, H), lambda i: (0, 0)),      # weights stay resident
            pl.BlockSpec((1, H), lambda i: (0, 0)),
            pl.BlockSpec((H, Np), lambda i: (0, 0)),
            pl.BlockSpec((1, Np), lambda i: (0, 0)),
        ],
        out_specs=pl.BlockSpec((tm_eff, Np), lambda i: (i, 0)),
        compiler_params=pltpu.CompilerParams(dimension_semantics=("parallel",)),
    )(xp, w1.astype(jnp.bfloat16), b1.reshape(1, H).astype(jnp.float32),
      w2p.astype(jnp.bfloat16), b2p.astype(jnp.float32))
    return out[:M, :N]


def im2col_3x3(x):
    """(N, H, W, Cin) -> (N*H*W, 9*Cin) fused im2col layout (stride 1, pad 1).

    Single fused tensor (not 9 stacked copies); the conv becomes ONE wide-K matmul.
    """
    N, H, W, Cin = x.shape
    xp = jnp.pad(x, ((0, 0), (1, 1), (1, 1), (0, 0)))
    taps = [xp[:, ky:ky + H, kx:kx + W, :] for ky in range(3) for kx in range(3)]
    return jnp.concatenate(taps, axis=-1).reshape(N * H * W, 9 * Cin)


def conv3x3(x, w, b, relu=True, tm=256):
    """3x3 conv, stride 1, pad 1.  x: (N,H,W,Cin) NHWC; w: (3,3,Cin,Cout) HWIO."""
    N, H, W, Cin = x.shape
    Cout = w.shape[-1]
    col = im2col_3x3(x)                                   # (N*H*W, 9*Cin)
    out = matmul_bias(col, w.reshape(9 * Cin, Cout), b, relu=relu, tm=tm)
    return out.reshape(N, H, W, Cout)


# ----------------------------------------------------------------------------
# JAX glue: anchors, box decoding, ROI pooling
# ----------------------------------------------------------------------------
BBOX_XFORM_CLIP = 4.135166556742356  # log(1000 / 16), as in maskrcnn_benchmark


def make_anchors(H, W, sizes, stride=1.0):
    ys = (jnp.arange(H, dtype=jnp.float32) + 0.5) * stride
    xs = (jnp.arange(W, dtype=jnp.float32) + 0.5) * stride
    cy, cx = jnp.meshgrid(ys, xs, indexing="ij")            # (H, W)
    half = jnp.asarray(sizes, jnp.float32) / 2.0             # (A,)
    x1 = cx[..., None] - half
    y1 = cy[..., None] - half
    x2 = cx[..., None] + half
    y2 = cy[..., None] + half
    return jnp.stack([x1, y1, x2, y2], axis=-1).reshape(-1, 4)  # (H*W*A, 4)


def decode_boxes(deltas, boxes, img_h, img_w, weights=(1.0, 1.0, 1.0, 1.0)):
    """R-CNN box decoding with configurable bbox_reg_weights + image clipping."""
    TO_REMOVE = 1.0
    widths = boxes[..., 2] - boxes[..., 0] + TO_REMOVE
    heights = boxes[..., 3] - boxes[..., 1] + TO_REMOVE
    ctr_x = boxes[..., 0] + 0.5 * widths
    ctr_y = boxes[..., 1] + 0.5 * heights

    wx, wy, ww, wh = weights
    dx = deltas[..., 0] / wx
    dy = deltas[..., 1] / wy
    dw = jnp.minimum(deltas[..., 2] / ww, BBOX_XFORM_CLIP)
    dh = jnp.minimum(deltas[..., 3] / wh, BBOX_XFORM_CLIP)

    pred_ctr_x = dx * widths + ctr_x
    pred_ctr_y = dy * heights + ctr_y
    pred_w = jnp.exp(dw) * widths
    pred_h = jnp.exp(dh) * heights

    x1 = jnp.clip(pred_ctr_x - 0.5 * pred_w, 0.0, img_w - TO_REMOVE)
    y1 = jnp.clip(pred_ctr_y - 0.5 * pred_h, 0.0, img_h - TO_REMOVE)
    x2 = jnp.clip(pred_ctr_x + 0.5 * pred_w - TO_REMOVE, 0.0, img_w - TO_REMOVE)
    y2 = jnp.clip(pred_ctr_y + 0.5 * pred_h - TO_REMOVE, 0.0, img_h - TO_REMOVE)
    return jnp.stack([x1, y1, x2, y2], axis=-1)


def roi_pool_nearest(features, boxes):
    """Simplified ROI feature extraction: nearest-neighbor 2x2 grid sampling.

    features: (N, H, W, C), boxes: (N, K, 4) in image coords (stride 1).
    Returns (N, K, 4*C).
    """
    # TODO(synk): true bilinear ROIAlign not implemented; for large proposal counts
    #             this should become a Pallas scalar-prefetch DMA row-gather
    #             (PrefetchScalarGridSpec + pl.Element) instead of XLA gathers.
    N, H, W, C = features.shape
    K = boxes.shape[1]
    feat_flat = features.reshape(N, H * W, C)
    x1, y1, x2, y2 = boxes[..., 0], boxes[..., 1], boxes[..., 2], boxes[..., 3]
    samples = []
    for sy in (0.25, 0.75):
        for sx in (0.25, 0.75):
            px = x1 + sx * (x2 - x1)
            py = y1 + sy * (y2 - y1)
            ix = jnp.clip(jnp.round(px), 0, W - 1).astype(jnp.int32)
            iy = jnp.clip(jnp.round(py), 0, H - 1).astype(jnp.int32)
            idx = iy * W + ix                                  # (N, K)
            idx_b = jnp.broadcast_to(idx[..., None], (N, K, C))
            samples.append(jnp.take_along_axis(feat_flat, idx_b, axis=1))
    return jnp.concatenate(samples, axis=-1)                   # (N, K, 4*C)


# ----------------------------------------------------------------------------
# GeneralizedRCNN (inference path)
# ----------------------------------------------------------------------------
class GeneralizedRCNNPallas:
    def __init__(self, key,
                 in_channels=3,
                 backbone_channels=(16, 32),
                 num_anchors=3,
                 anchor_sizes=(4.0, 8.0, 12.0),
                 pre_nms_top_n=8,
                 num_classes=6,
                 representation_size=64):
        self.num_anchors = num_anchors
        self.anchor_sizes = anchor_sizes
        self.top_n = pre_nms_top_n
        self.num_classes = num_classes

        c1, c_out = backbone_channels
        self.out_channels = c_out
        pooled_dim = 4 * c_out  # 2x2 sampling grid * channels

        def init(k, shape, scale=0.05):
            return scale * jax.random.normal(k, shape, jnp.float32)

        ks = iter(jax.random.split(key, 20))
        self.p = {
            # backbone
            "bb_w1": init(next(ks), (3, 3, in_channels, c1)),
            "bb_b1": jnp.zeros((c1,), jnp.float32),
            "bb_w2": init(next(ks), (3, 3, c1, c_out)),
            "bb_b2": jnp.zeros((c_out,), jnp.float32),
            # rpn head
            "rpn_w": init(next(ks), (3, 3, c_out, c_out)),
            "rpn_b": jnp.zeros((c_out,), jnp.float32),
            "cls_w": init(next(ks), (c_out, num_anchors)),
            "cls_b": jnp.zeros((num_anchors,), jnp.float32),
            "box_w": init(next(ks), (c_out, num_anchors * 4)),
            "box_b": jnp.zeros((num_anchors * 4,), jnp.float32),
            # roi box head
            "fc1_w": init(next(ks), (pooled_dim, representation_size)),
            "fc1_b": jnp.zeros((representation_size,), jnp.float32),
            "cls_score_w": init(next(ks), (representation_size, num_classes)),
            "cls_score_b": jnp.zeros((num_classes,), jnp.float32),
            "bbox_pred_w": init(next(ks), (representation_size, num_classes * 4)),
            "bbox_pred_b": jnp.zeros((num_classes * 4,), jnp.float32),
        }

    def __call__(self, images):
        """images: (N, 3, H, W) float32 (NCHW like PyTorch).  Eval path only."""
        p = self.p
        x = jnp.transpose(images, (0, 2, 3, 1))               # -> NHWC
        N, H, W, _ = x.shape
        A, K = self.num_anchors, self.top_n

        # ---------------- backbone ----------------
        f = conv3x3(x, p["bb_w1"], p["bb_b1"], relu=True)
        features = conv3x3(f, p["bb_w2"], p["bb_b2"], relu=True)   # (N,H,W,C)
        C = features.shape[-1]

        # ---------------- rpn ----------------
        # 3x3 conv (+ReLU) fused with the concatenated 1x1 cls/box heads:
        # a single Pallas kernel, the conv activation never leaves VMEM.
        col = im2col_3x3(features)                                 # (NHW, 9C)
        w_head = jnp.concatenate([p["cls_w"], p["box_w"]], axis=1)  # (C, 5A)
        b_head = jnp.concatenate([p["cls_b"], p["box_b"]])
        head_out = mlp2(col, p["rpn_w"].reshape(9 * C, C), p["rpn_b"],
                        w_head, b_head, tm=128)                    # (NHW, 5A)

        obj_logits = head_out[:, :A].reshape(N, H * W * A)
        box_deltas = head_out[:, A:].reshape(N, H * W * A, 4)

        anchors = make_anchors(H, W, self.anchor_sizes)            # (HWA, 4)
        all_boxes = decode_boxes(box_deltas, anchors[None], float(H), float(W),
                                 weights=(1.0, 1.0, 1.0, 1.0))
        obj_scores = jax.nn.sigmoid(obj_logits)

        # TODO(synk): NMS has no clean Pallas equivalent; proposals are plain top-k.
        topk_scores, topk_idx = jax.lax.top_k(obj_scores, K)        # (N, K)
        idx_b = jnp.broadcast_to(topk_idx[..., None], (N, K, 4))
        proposals = jnp.take_along_axis(all_boxes, idx_b, axis=1)   # (N, K, 4)

        # ---------------- roi heads ----------------
        pooled = roi_pool_nearest(features, proposals)              # (N, K, 4C)
        pooled = pooled.reshape(N * K, 4 * C)
        # fc1 (+ReLU) fused with the concatenated cls_score / bbox_pred heads.
        w_pred = jnp.concatenate([p["cls_score_w"], p["bbox_pred_w"]], axis=1)
        b_pred = jnp.concatenate([p["cls_score_b"], p["bbox_pred_b"]])
        combined = mlp2(pooled, p["fc1_w"], p["fc1_b"], w_pred, b_pred, tm=128)
        cls_logits = combined[:, :self.num_classes]
        box_regs = combined[:, self.num_classes:]

        probs = jax.nn.softmax(cls_logits, axis=-1).reshape(N, K, self.num_classes)
        fg_probs = probs[..., 1:]                        # drop background (class 0)
        labels = jnp.argmax(fg_probs, axis=-1) + 1       # (N, K)
        scores = jnp.max(fg_probs, axis=-1)              # (N, K)

        box_regs = box_regs.reshape(N, K, self.num_classes, 4)
        lbl_idx = jnp.broadcast_to(labels[..., None, None], (N, K, 1, 4))
        cls_deltas = jnp.take_along_axis(box_regs, lbl_idx, axis=2)[:, :, 0, :]
        final_boxes = decode_boxes(cls_deltas, proposals, float(H), float(W),
                                   weights=(10.0, 10.0, 5.0, 5.0))

        # TODO(synk): training losses / GET_FEATURE path intentionally not reproduced.
        return {
            "boxes": final_boxes,        # (N, K, 4)
            "scores": scores,            # (N, K)
            "labels": labels,            # (N, K) int
            "rpn_objectness": topk_scores,
        }


if __name__ == "__main__":
    key = jax.random.PRNGKey(0)
    pkey, ikey = jax.random.split(key)

    model = GeneralizedRCNNPallas(pkey)
    images = jax.random.normal(ikey, (2, 3, 16, 16), jnp.float32)   # NCHW input

    out = model(images)
    jax.block_until_ready(out)

    assert out["boxes"].shape == (2, 8, 4)
    assert out["scores"].shape == (2, 8)
    assert out["labels"].shape == (2, 8)
    print("KERNEL_OK")
</pallas_src>

<mosaic_0001>
module attributes {stable_mosaic.version = 11 : i64} {
  func.func @_matmul_bias_kernel(%arg0: i32, %arg1: memref<256x27xbf16, #tpu.memory_space<vmem>>, %arg2: memref<27x16xbf16, #tpu.memory_space<vmem>>, %arg3: memref<1x16xf32, #tpu.memory_space<vmem>>, %arg4: memref<256x16xf32, #tpu.memory_space<vmem>>) attributes {dimension_semantics = [#tpu.dimension_semantics<parallel>], iteration_bounds = array<i64: 2>, scalar_prefetch = 0 : i64, scratch_operands = 0 : i64, tpu.core_type = #tpu.core_type<tc>, window_params = [{transform_indices = @transform_0, window_bounds = array<i64: 256, 27>}, {pipeline_mode = #tpu.pipeline_mode<synchronous>, transform_indices = @transform_1, window_bounds = array<i64: 27, 16>}, {pipeline_mode = #tpu.pipeline_mode<synchronous>, transform_indices = @transform_2, window_bounds = array<i64: 1, 16>}, {transform_indices = @transform_3, window_bounds = array<i64: 256, 16>}]} {
    %c0 = arith.constant 0 : index
    %c0_0 = arith.constant 0 : index
    %0 = vector.load %arg1[%c0, %c0_0] : memref<256x27xbf16, #tpu.memory_space<vmem>>, vector<256x27xbf16>
    %c0_1 = arith.constant 0 : index
    %c0_2 = arith.constant 0 : index
    %1 = vector.load %arg2[%c0_1, %c0_2] : memref<27x16xbf16, #tpu.memory_space<vmem>>, vector<27x16xbf16>
    %cst = arith.constant dense<0.000000e+00> : vector<256x16xf32>
    %2 = tpu.matmul %0, %1, %cst {dimension_numbers = #tpu.dot_dimension_numbers<[1], [0], [0], [1], [0, 0, 1, 1], [], []>} : vector<256x27xbf16>, vector<27x16xbf16>, vector<256x16xf32> -> vector<256x16xf32>
    %c0_3 = arith.constant 0 : index
    %c0_4 = arith.constant 0 : index
    %3 = vector.load %arg3[%c0_3, %c0_4] : memref<1x16xf32, #tpu.memory_space<vmem>>, vector<1x16xf32>
    %4 = vector.broadcast %3 : vector<1x16xf32> to vector<256x16xf32>
    %5 = arith.addf %2, %4 : vector<256x16xf32>
    %cst_5 = arith.constant 0.000000e+00 : f32
    %6 = vector.broadcast %cst_5 : f32 to vector<256x16xf32>
    %7 = arith.maximumf %5, %6 : vector<256x16xf32>
    %c0_6 = arith.constant 0 : index
    %c0_7 = arith.constant 0 : index
    %8 = vector.load %arg4[%c0_6, %c0_7] : memref<256x16xf32, #tpu.memory_space<vmem>>, vector<256x16xf32>
    tpu.vector_store %arg4[%c0_6, %c0_7], %7 {strides = array<i32>} : memref<256x16xf32, #tpu.memory_space<vmem>>, vector<256x16xf32>,
    return
  }
  func.func @transform_0(%arg0: i32) -> (i32, i32) {
    %c0_i32 = arith.constant 0 : i32
    %c0_i32_0 = arith.constant 0 : i32
    return %arg0, %c0_i32 : i32, i32
  }
  func.func @transform_1(%arg0: i32) -> (i32, i32) {
    %c0_i32 = arith.constant 0 : i32
    %c0_i32_0 = arith.constant 0 : i32
    %c0_i32_1 = arith.constant 0 : i32
    return %c0_i32, %c0_i32_0 : i32, i32
  }
  func.func @transform_2(%arg0: i32) -> (i32, i32) {
    %c0_i32 = arith.constant 0 : i32
    %c0_i32_0 = arith.constant 0 : i32
    %c0_i32_1 = arith.constant 0 : i32
    return %c0_i32, %c0_i32_0 : i32, i32
  }
  func.func @transform_3(%arg0: i32) -> (i32, i32) {
    %c0_i32 = arith.constant 0 : i32
    %c0_i32_0 = arith.constant 0 : i32
    return %arg0, %c0_i32 : i32, i32
  }
}

</mosaic_0001>

<bundles_post_ra>
// kernel: tpu_custom_call.1
= control target key start
LH: loop header
LB: loop body
LE: loop exit
PB: predicated region body
PF: predicated region fallthrough
CT: control target
= control target key end

     0   :  { %s807_s12 = smov 0   ;;  %s971_s0 = inlined_call_operand.vmem [shape: bf16[512,27], index: 0, kind: input, shape index: {}]   ;;  %s972_s1 = inlined_call_operand.vmem [shape: bf16[27,16], index: 1, kind: input, shape index: {}]   ;;  %s973_s2 = inlined_call_operand.vmem [shape: f32[1,16], index: 2, kind: input, shape index: {}]   ;;  %s974_s3 = inlined_call_operand.vmem [shape: f32[512,16], index: 3, kind: output, shape index: {}]  }
   0x1 LB: > { %s647_s13 = sadd.s32 4294967295, %s784_s12   ;;  %p651_p0 = scmp.ge.s32.totalorder %s784_s12, 1  ;;  %s784_s12 = sphi %s807_s12, %s13_s12  }
   0x2   : > { %p138_p1 = scmp.lt.s32.totalorder %s784_s12, 3 }
   0x4   : > { %p139_p2 = pnand %p651_p0, %p138_p1 }
   0x5   : > { %v760_v0 = vld [vmem:[%s972_s1] sm:$0xff] (!%p139_p2)   ;;  %vm358_vm0 = vcmask (!%p139_p2), 1044480   ;;  %v761_v1 = vld [vmem:[%s972_s1 + $0x8] sm:$0x3f] (!%p139_p2)   ;;  %vm359_vm1 = vcmask (!%p139_p2), 1045504   ;;  %s652_s18 = sshll.u32 (!%p139_p2), %s647_s13, 5 }
   0x6   : > { %142 = sbr.rel (%p139_p2) target bundleno = 263 (0x107), region = 32  ;;  %711 = vmatprep.subr.bf16.mxu0 (!%p139_p2), %v760_v0  ;;  %747 = vmatprep.subr.bf16.mxu1 (!%p139_p2), %v760_v0  ;;  %v786_v2 = vmov (!%p139_p2), 65535   ;;  %p163_p3 = scmp.lt.s32.totalorder (!%p139_p2), %s652_s18, 63  ;;  %vm309_vm2 = vcmask (!%p139_p2), 220160   ;;  %v864_v22 = vld [vmem:[%s973_s2] ss:$0 sm:$0xff] (!%p139_p2) }
   0x7   : > { %712 = vmatpush3.bf16.msra.mxu0 (!%p139_p2), %v760_v0  ;;  %749 = vmatpush3.bf16.msra.mxu1 (!%p139_p2), %v760_v0  ;;  %v360_v3 = vsel (!%p139_p2), %vm358_vm0, 4294967295, %v786_v2  ;;  %vm558_vm3 = vcmask (!%p139_p2), 130048  }
   0x8   : > { %v361_v4 = vsel (!%p139_p2), %vm359_vm1, %v360_v3, 0 }
   0x9   : > { %v363_v5 = vand.u32 (!%p139_p2), %v761_v1, %v361_v4 }
   0xb   : > { %713 = vmatprep.subr.bf16.mxu0 (!%p139_p2), %v363_v5  ;;  %748 = vmatprep.subr.bf16.mxu1 (!%p139_p2), %v363_v5 }
   0xc   : > { %714 = vmatpush3.bf16.msra.mxu0 (!%p139_p2), %v363_v5  ;;  %750 = vmatpush3.bf16.msra.mxu1 (!%p139_p2), %v363_v5 }
   0xd   : > { %s976_s18 = smov (!%p163_p3, %s652_s18), 63 }
   0xe   : > { %s653_s19 = sshll.u32 %s976_s18, 2  ;;  %s655_s25 = sshll.u32 %s976_s18, 3 }
   0xf   : > { %s827_s22 = scalar_lea.vmem %s971_s0, %s653_s19  ;;  %s871_s28 = scalar_lea.vmem %s974_s3, %s655_s25 }
  0x10   : > { %v762_v6 = vld [vmem:[%s827_s22] sm:$0xff]   ;;  %v764_v8 = vld [vmem:[%s827_s22 + $0x8] sm:$0xff]   ;;  %v766_v10 = vld [vmem:[%s827_s22 + $0x10] sm:$0xff]  }
  0x11   : > { %v763_v7 = vld [vmem:[%s827_s22 + $0x40] sm:$0xff]   ;;  %715 = vmatprep.mubr.msk.bf16.mxu0 %vm309_vm2, %v762_v6  ;;  %v765_v9 = vld [vmem:[%s827_s22 + $0x48] sm:$0xff]   ;;  %v767_v11 = vld [vmem:[%s827_s22 + $0x50] sm:$0xff]  }
  0x12   : > { %731 = vmatprep.mubr.msk.bf16.mxu1 %vm309_vm2, %v763_v7  ;;  %716 = vmatmul.mubr.msk.bf16.vlgmr.msra.gmra.mrb[0].mxu0 %vm309_vm2, %v764_v8  ;;  %v768_v12 = vld [vmem:[%s827_s22 + $0x18] sm:$0xff]   ;;  %v770_v14 = vld [vmem:[%s827_s22 + $0x20] sm:$0xff]   ;;  %v772_v16 = vld [vmem:[%s827_s22 + $0x28] sm:$0xff]  }
  0x13   : > { %732 = vmatmul.mubr.msk.bf16.vlgmr.msra.gmra.mrb[0].mxu1 %vm309_vm2, %v765_v9  ;;  %719 = vmatprep.mubr.msk.bf16.mxu0 %vm309_vm2, %v766_v10  ;;  %v769_v13 = vld [vmem:[%s827_s22 + $0x58] sm:$0xff]   ;;  %v771_v15 = vld [vmem:[%s827_s22 + $0x60] sm:$0xff]   ;;  %v773_v17 = vld [vmem:[%s827_s22 + $0x68] sm:$0xff]  }
  0x14   : > { %735 = vmatprep.mubr.msk.bf16.mxu1 %vm309_vm2, %v767_v11  ;;  %v774_v18 = vld [vmem:[%s827_s22 + $0x30] sm:$0xff]   ;;  %v776_v20 = vld [vmem:[%s827_s22 + $0x38] sm:$0xff]  }
  0x15   : > { %v775_v19 = vld [vmem:[%s827_s22 + $0x70] sm:$0xff]   ;;  %v777_v21 = vld [vmem:[%s827_s22 + $0x78] sm:$0xff]  }
  0x1a   : > { %720 = vmatmul.mubr.msk.bf16.gmra.mrb[4].mxu0 %vm309_vm2, %v768_v12 }
  0x1b   : > { %736 = vmatmul.mubr.msk.bf16.gmra.mrb[4].mxu1 %vm309_vm2, %v769_v13  ;;  %723 = vmatprep.mubr.msk.bf16.mxu0 %vm309_vm2, %v770_v14 }
  0x1c   : > { %739 = vmatprep.mubr.msk.bf16.mxu1 %vm309_vm2, %v771_v15 }
  0x22   : > { %724 = vmatmul.mubr.msk.bf16.gmra.mrb[8].mxu0 %vm309_vm2, %v772_v16 }
  0x23   : > { %740 = vmatmul.mubr.msk.bf16.gmra.mrb[8].mxu1 %vm309_vm2, %v773_v17  ;;  %727 = vmatprep.mubr.msk.bf16.mxu0 %vm309_vm2, %v774_v18 }
  0x24   : > { %743 = vmatprep.mubr.msk.bf16.mxu1 %vm309_vm2, %v775_v19 }
  0x2a   : > { %728 = vmatmul.mubr.msk.bf16.gmra.mrb[12].mxu0 %vm309_vm2, %v776_v20 }
  0x2b   : > { %744 = vmatmul.mubr.msk.bf16.gmra.mrb[12].mxu1 %vm309_vm2, %v777_v21 }
  0xe5   : > { %v717_v23 = vpop.f32.mrb[0].mxu0 }
  0xe6   : > { %v408_v24 = vadd.f32 %v717_v23, %v864_v22  ;;  %v733_v25 = vpop.f32.mrb[0].mxu1  ;;  %v399_v26 = vpop.f32.mrb[1].mxu0 }
  0xe7   : > { %v472_v27 = vadd.f32 %v733_v25, %v864_v22  ;;  %v400_v28 = vadd.f32 %v864_v22, %v399_v26  ;;  %v463_v29 = vpop.f32.mrb[1].mxu1  ;;  %v718_v30 = vpop.f32.mrb[2].mxu0 }
  0xe8   : > { %v528_v31 = vmax.f32 %v408_v24, 0.0  ;;  %v464_v32 = vadd.f32 %v864_v22, %v463_v29  ;;  %v411_v33 = vadd.f32 %v718_v30, %v864_v22  ;;  %v734_v34 = vpop.f32.mrb[2].mxu1  ;;  %v402_v35 = vpop.f32.mrb[3].mxu0 }
  0xe9   : > { %v544_v36 = vmax.f32 %v472_v27, 0.0  ;;  %v526_v37 = vmax.f32 %v400_v28, 0.0  ;;  %v475_v38 = vadd.f32 %v734_v34, %v864_v22  ;;  %v403_v39 = vadd.f32 %v864_v22, %v402_v35  ;;  %v466_v40 = vpop.f32.mrb[3].mxu1 }
  0xea   : > { %561 = vst.msk [vmem:[%s871_s28 + $0x10] sm:$0xff] %vm558_vm3, %v528_v31  ;;  %v542_v41 = vmax.f32 %v464_v32, 0.0  ;;  %v529_v42 = vmax.f32 %v411_v33, 0.0  ;;  %v467_v43 = vadd.f32 %v864_v22, %v466_v40 }
  0xeb   : > { %577 = vst.msk [vmem:[%s871_s28 + $0x90] sm:$0xff] %vm558_vm3, %v544_v36  ;;  %559 = vst.msk [vmem:[%s871_s28] sm:$0xff] %vm558_vm3, %v526_v37  ;;  %v545_v44 = vmax.f32 %v475_v38, 0.0  ;;  %v527_v45 = vmax.f32 %v403_v39, 0.0 }
  0xec   : > { %575 = vst.msk [vmem:[%s871_s28 + $0x80] sm:$0xff] %vm558_vm3, %v542_v41  ;;  %562 = vst.msk [vmem:[%s871_s28 + $0x18] sm:$0xff] %vm558_vm3, %v529_v42  ;;  %v543_v46 = vmax.f32 %v467_v43, 0.0 }
  0xed   : > { %578 = vst.msk [vmem:[%s871_s28 + $0x98] sm:$0xff] %vm558_vm3, %v545_v44  ;;  %560 = vst.msk [vmem:[%s871_s28 + $0x8] sm:$0xff] %vm558_vm3, %v527_v45  ;;  %v721_v47 = vpop.f32.mrb[4].mxu0 }
  0xee   : > { %576 = vst.msk [vmem:[%s871_s28 + $0x88] sm:$0xff] %vm558_vm3, %v543_v46  ;;  %v424_v48 = vadd.f32 %v721_v47, %v864_v22  ;;  %v737_v49 = vpop.f32.mrb[4].mxu1  ;;  %v415_v50 = vpop.f32.mrb[5].mxu0 }
  0xef   : > { %v488_v51 = vadd.f32 %v737_v49, %v864_v22  ;;  %v416_v52 = vadd.f32 %v864_v22, %v415_v50  ;;  %v479_v53 = vpop.f32.mrb[5].mxu1  ;;  %v722_v54 = vpop.f32.mrb[6].mxu0 }
  0xf0   : > { %v532_v55 = vmax.f32 %v424_v48, 0.0  ;;  %v480_v56 = vadd.f32 %v864_v22, %v479_v53  ;;  %v427_v57 = vadd.f32 %v722_v54, %v864_v22  ;;  %v738_v58 = vpop.f32.mrb[6].mxu1  ;;  %v418_v59 = vpop.f32.mrb[7].mxu0 }
  0xf1   : > { %v548_v60 = vmax.f32 %v488_v51, 0.0  ;;  %v530_v61 = vmax.f32 %v416_v52, 0.0  ;;  %v491_v62 = vadd.f32 %v738_v58, %v864_v22  ;;  %v419_v63 = vadd.f32 %v864_v22, %v418_v59  ;;  %v482_v0 = vpop.f32.mrb[7].mxu1 }
  0xf2   : > { %565 = vst.msk [vmem:[%s871_s28 + $0x30] sm:$0xff] %vm558_vm3, %v532_v55  ;;  %v546_v1 = vmax.f32 %v480_v56, 0.0  ;;  %v533_v2 = vmax.f32 %v427_v57, 0.0  ;;  %v483_v3 = vadd.f32 %v864_v22, %v482_v0 }
  0xf3   : > { %581 = vst.msk [vmem:[%s871_s28 + $0xb0] sm:$0xff] %vm558_vm3, %v548_v60  ;;  %563 = vst.msk [vmem:[%s871_s28 + $0x20] sm:$0xff] %vm558_vm3, %v530_v61  ;;  %v549_v4 = vmax.f32 %v491_v62, 0.0  ;;  %v531_v5 = vmax.f32 %v419_v63, 0.0 }
  0xf4   : > { %579 = vst.msk [vmem:[%s871_s28 + $0xa0] sm:$0xff] %vm558_vm3, %v546_v1  ;;  %566 = vst.msk [vmem:[%s871_s28 + $0x38] sm:$0xff] %vm558_vm3, %v533_v2  ;;  %v547_v6 = vmax.f32 %v483_v3, 0.0 }
  0xf5   : > { %582 = vst.msk [vmem:[%s871_s28 + $0xb8] sm:$0xff] %vm558_vm3, %v549_v4  ;;  %564 = vst.msk [vmem:[%s871_s28 + $0x28] sm:$0xff] %vm558_vm3, %v531_v5  ;;  %v725_v7 = vpop.f32.mrb[8].mxu0 }
  0xf6   : > { %580 = vst.msk [vmem:[%s871_s28 + $0xa8] sm:$0xff] %vm558_vm3, %v547_v6  ;;  %v440_v8 = vadd.f32 %v725_v7, %v864_v22  ;;  %v741_v9 = vpop.f32.mrb[8].mxu1  ;;  %v431_v10 = vpop.f32.mrb[9].mxu0 }
  0xf7   : > { %v504_v11 = vadd.f32 %v741_v9, %v864_v22  ;;  %v432_v12 = vadd.f32 %v864_v22, %v431_v10  ;;  %v495_v13 = vpop.f32.mrb[9].mxu1  ;;  %v726_v14 = vpop.f32.mrb[10].mxu0 }
  0xf8   : > { %v536_v15 = vmax.f32 %v440_v8, 0.0  ;;  %v496_v16 = vadd.f32 %v864_v22, %v495_v13  ;;  %v443_v17 = vadd.f32 %v726_v14, %v864_v22  ;;  %v742_v18 = vpop.f32.mrb[10].mxu1  ;;  %v434_v19 = vpop.f32.mrb[11].mxu0 }
  0xf9   : > { %v552_v20 = vmax.f32 %v504_v11, 0.0  ;;  %v534_v21 = vmax.f32 %v432_v12, 0.0  ;;  %v507_v23 = vadd.f32 %v742_v18, %v864_v22  ;;  %v435_v24 = vadd.f32 %v864_v22, %v434_v19  ;;  %v498_v25 = vpop.f32.mrb[11].mxu1 }
  0xfa   : > { %569 = vst.msk [vmem:[%s871_s28 + $0x50] sm:$0xff] %vm558_vm3, %v536_v15  ;;  %v550_v26 = vmax.f32 %v496_v16, 0.0  ;;  %v537_v27 = vmax.f32 %v443_v17, 0.0  ;;  %v499_v28 = vadd.f32 %v864_v22, %v498_v25 }
  0xfb   : > { %585 = vst.msk [vmem:[%s871_s28 + $0xd0] sm:$0xff] %vm558_vm3, %v552_v20  ;;  %567 = vst.msk [vmem:[%s871_s28 + $0x40] sm:$0xff] %vm558_vm3, %v534_v21  ;;  %v553_v29 = vmax.f32 %v507_v23, 0.0  ;;  %v535_v30 = vmax.f32 %v435_v24, 0.0 }
  0xfc   : > { %583 = vst.msk [vmem:[%s871_s28 + $0xc0] sm:$0xff] %vm558_vm3, %v550_v26  ;;  %570 = vst.msk [vmem:[%s871_s28 + $0x58] sm:$0xff] %vm558_vm3, %v537_v27  ;;  %v551_v31 = vmax.f32 %v499_v28, 0.0 }
  0xfd   : > { %586 = vst.msk [vmem:[%s871_s28 + $0xd8] sm:$0xff] %vm558_vm3, %v553_v29  ;;  %568 = vst.msk [vmem:[%s871_s28 + $0x48] sm:$0xff] %vm558_vm3, %v535_v30  ;;  %v729_v32 = vpop.f32.mrb[12].mxu0 }
  0xfe   : > { %584 = vst.msk [vmem:[%s871_s28 + $0xc8] sm:$0xff] %vm558_vm3, %v551_v31  ;;  %v456_v33 = vadd.f32 %v729_v32, %v864_v22  ;;  %v745_v34 = vpop.f32.mrb[12].mxu1  ;;  %v447_v35 = vpop.f32.mrb[13].mxu0 }
  0xff   : > { %v520_v36 = vadd.f32 %v745_v34, %v864_v22  ;;  %v448_v37 = vadd.f32 %v864_v22, %v447_v35  ;;  %v511_v38 = vpop.f32.mrb[13].mxu1  ;;  %v730_v39 = vpop.f32.mrb[14].mxu0 }
 0x100   : > { %v540_v40 = vmax.f32 %v456_v33, 0.0  ;;  %v512_v41 = vadd.f32 %v864_v22, %v511_v38  ;;  %v459_v42 = vadd.f32 %v730_v39, %v864_v22  ;;  %v746_v43 = vpop.f32.mrb[14].mxu1  ;;  %v450_v44 = vpop.f32.mrb[15].mxu0 }
 0x101   : > { %v556_v45 = vmax.f32 %v520_v36, 0.0  ;;  %v538_v46 = vmax.f32 %v448_v37, 0.0  ;;  %v523_v47 = vadd.f32 %v746_v43, %v864_v22  ;;  %v451_v48 = vadd.f32 %v864_v22, %v450_v44  ;;  %v514_v49 = vpop.f32.mrb[15].mxu1 }
 0x102   : > { %573 = vst.msk [vmem:[%s871_s28 + $0x70] sm:$0xff] %vm558_vm3, %v540_v40  ;;  %v554_v50 = vmax.f32 %v512_v41, 0.0  ;;  %v541_v51 = vmax.f32 %v459_v42, 0.0  ;;  %v515_v52 = vadd.f32 %v864_v22, %v514_v49 }
 0x103   : > { %589 = vst.msk [vmem:[%s871_s28 + $0xf0] sm:$0xff] %vm558_vm3, %v556_v45  ;;  %571 = vst.msk [vmem:[%s871_s28 + $0x60] sm:$0xff] %vm558_vm3, %v538_v46  ;;  %v557_v53 = vmax.f32 %v523_v47, 0.0  ;;  %v539_v54 = vmax.f32 %v451_v48, 0.0 }
 0x104   : > { %587 = vst.msk [vmem:[%s871_s28 + $0xe0] sm:$0xff] %vm558_vm3, %v554_v50  ;;  %574 = vst.msk [vmem:[%s871_s28 + $0x78] sm:$0xff] %vm558_vm3, %v541_v51  ;;  %v555_v55 = vmax.f32 %v515_v52, 0.0 }
 0x105   : > { %590 = vst.msk [vmem:[%s871_s28 + $0xf8] sm:$0xff] %vm558_vm3, %v557_v53  ;;  %572 = vst.msk [vmem:[%s871_s28 + $0x68] sm:$0xff] %vm558_vm3, %v539_v54 }
 0x106   : > { %588 = vst.msk [vmem:[%s871_s28 + $0xe8] sm:$0xff] %vm558_vm3, %v555_v55 }
 0x107 PF: > { %s13_s12 = sadd.s32 1, %s784_s12  }
 0x108   : > { %p10_p4 = scmp.ge.s32.totalorder %s13_s12, 4  }
 0x10a   :  { %12 = sbr.rel (!%p10_p4) target bundleno = 1 (0x1), region = 62 }

</bundles_post_ra>
